<compile_context>
chip_gen: v7x
topology: tpu7x:2x2x1
jax: 0.10.0
libtpu: 0.0.40
codegen_flags: <defaults>
</compile_context>

<pallas_src>
import functools

import jax
import jax.numpy as jnp
from jax.experimental import pallas as pl
from jax.experimental.pallas import tpu as pltpu


def _round_up(x, m):
    return (x + m - 1) // m * m


def _sublane_multiple(dtype):
    # 8 for f32, 16 for bf16, 32 for int8/fp8.
    return max(8, 32 // jnp.dtype(dtype).itemsize)


def _plan_dim(size, desired, align):
    """Return (padded_size, tile).

    tile is a multiple of `align` and divides padded_size. Padding is kept to
    dtype granularity whenever possible (full tile-multiple padding only as a
    last resort), so we do not force XLA to materialize a tile-padded copy of
    a large operand in HBM.
    """
    desired = max(align, (desired // align) * align)
    padded = _round_up(size, align)
    if padded <= desired:
        return padded, padded
    if padded % desired == 0:
        return padded, desired
    # Look for a reasonably large divisor of the lightly padded size.
    t = desired
    while t >= max(align, desired // 2):
        if padded % t == 0:
            return padded, t
        t -= align
    # Awkward size: accept bounded extra padding (< desired) instead of a tiny tile.
    return _round_up(size, desired), desired


def _vmem_capacity_bytes():
    """Best-effort device VMEM capacity (per TensorCore)."""
    try:
        info = pltpu.get_tpu_info()
        for attr in ("vmem_capacity_bytes", "vmem_size_bytes", "vmem_bytes"):
            v = getattr(info, attr, None)
            if isinstance(v, int) and v > 0:
                return v
    except Exception:
        pass
    return 64 * 1024 * 1024  # conservative: v7x per-TC VMEM


def _fused_body(emb_ref, w_ref, out_ref, acc_ref, ssq_ref, mxu_dtype):
    """One (j, i, k) grid step.  acc_ref may alias out_ref (f32 output path)."""
    i = pl.program_id(1)   # batch-block index
    k = pl.program_id(2)   # reduction (embedding) block index

    @pl.when(k == 0)
    def _():
        acc_ref[...] = jnp.zeros_like(acc_ref)

    # Fused per-column sum-of-squares of W: computed only during the i == 0
    # sweep (the W tile is already resident in VMEM for the matmul) and reused
    # for every later i block of the same column block j.
    @pl.when(jnp.logical_and(i == 0, k == 0))
    def _():
        ssq_ref[...] = jnp.zeros_like(ssq_ref)

    w = w_ref[...]

    @pl.when(i == 0)
    def _():
        wf = w.astype(jnp.float32)
        ssq_ref[...] += jnp.sum(wf * wf, axis=0, keepdims=True)

    lhs = emb_ref[...]
    rhs = w
    if mxu_dtype is not None:
        lhs = lhs.astype(mxu_dtype)
        rhs = rhs.astype(mxu_dtype)
    acc_ref[...] += jnp.dot(lhs, rhs, preferred_element_type=jnp.float32)

    @pl.when(k == pl.num_programs(2) - 1)
    def _():
        # torch F.normalize(dim=0): v / max(||v||, 1e-12); padded (all-zero)
        # columns give 0 * 1e12 = 0 and are sliced off by the wrapper.
        inv = 1.0 / jnp.maximum(jnp.sqrt(ssq_ref[...]), 1e-12)
        out_ref[...] = (acc_ref[...] * inv).astype(out_ref.dtype)


def _kernel_f32_out(emb_ref, w_ref, out_ref, ssq_ref, *, mxu_dtype):
    # f32 output: accumulate directly into the (VMEM-resident) output block.
    _fused_body(emb_ref, w_ref, out_ref, out_ref, ssq_ref, mxu_dtype)


def _kernel_narrow_out(emb_ref, w_ref, out_ref, acc_ref, ssq_ref, *, mxu_dtype):
    _fused_body(emb_ref, w_ref, out_ref, acc_ref, ssq_ref, mxu_dtype)


def classifier_forward(embeddings, kernel, *, tm=512, tn=1024, tk=1024,
                       out_dtype=None, mxu_dtype=None):
    """logits = embeddings @ F.normalize(kernel, dim=0)   (torch semantics).

    mxu_dtype: optional narrower dtype (e.g. jnp.bfloat16) for the MXU
    operands only; accumulation and the norm math remain f32. Default None
    keeps the caller's dtype on the MXU.
    """
    B, E = embeddings.shape
    E2, C = kernel.shape
    assert E == E2, "embedding_size mismatch"
    out_dtype = jnp.dtype(out_dtype or embeddings.dtype)

    # --- Tiling plan: light (dtype-granularity) padding + divisor tiles. ---
    m_align = _sublane_multiple(embeddings.dtype)
    Bp, tm = _plan_dim(B, tm, m_align)
    Cp, tn = _plan_dim(C, tn, 128)
    Ep, tk = _plan_dim(E, tk, 128)

    emb_p = embeddings
    if (Bp, Ep) != (B, E):
        emb_p = jnp.pad(embeddings, ((0, Bp - B), (0, Ep - E)))
    w_p = kernel
    if (Ep, Cp) != (E, C):
        w_p = jnp.pad(kernel, ((0, Ep - E), (0, Cp - C)))

    acc_into_out = out_dtype == jnp.dtype(jnp.float32)
    if acc_into_out:
        kern = functools.partial(_kernel_f32_out, mxu_dtype=mxu_dtype)
        scratch = [pltpu.VMEM((1, tn), jnp.float32)]          # ssq
    else:
        kern = functools.partial(_kernel_narrow_out, mxu_dtype=mxu_dtype)
        scratch = [pltpu.VMEM((tm, tn), jnp.float32),          # f32 accumulator
                   pltpu.VMEM((1, tn), jnp.float32)]           # ssq

    # --- VMEM budget (generation-aware: v7x 64 MiB/TC, v5e/v6e 128 MiB). ---
    ws = (2 * tm * tk * emb_p.dtype.itemsize        # double-buffered emb tiles
          + 2 * tk * tn * w_p.dtype.itemsize        # double-buffered W tiles
          + 2 * tm * tn * out_dtype.itemsize        # double-buffered out tiles
          + (0 if acc_into_out else tm * tn * 4)    # acc scratch
          + 8 * tn * 4)                             # ssq scratch (sublane-padded)
    vmem_cap = _vmem_capacity_bytes()
    vmem_limit = int(min(max(48 * 1024 * 1024, int(1.25 * ws)),
                         vmem_cap * 3 // 4,
                         100 * 1024 * 1024))

    grid = (Cp // tn, Bp // tm, Ep // tk)   # (j, i, k): megacore split along C

    out_p = pl.pallas_call(
        kern,
        out_shape=jax.ShapeDtypeStruct((Bp, Cp), out_dtype),
        grid=grid,
        in_specs=[
            pl.BlockSpec((tm, tk), lambda j, i, k: (i, k)),   # embeddings tile
            pl.BlockSpec((tk, tn), lambda j, i, k: (k, j)),   # weight tile (unnormalized)
        ],
        out_specs=pl.BlockSpec((tm, tn), lambda j, i, k: (i, j)),
        scratch_shapes=scratch,
        compiler_params=pltpu.CompilerParams(
            dimension_semantics=("parallel", "arbitrary", "arbitrary"),
            vmem_limit_bytes=vmem_limit),
    )(emb_p, w_p)

    if (Bp, Cp) != (B, C):
        out_p = out_p[:B, :C]
    return out_p


def init_classifier_kernel(key, embedding_size, num_classes):
    """Deterministic init mimicking:
       torch.Tensor(E, C).uniform_(-1, 1).renorm_(2, 1, 1e-5).mul_(1e5)
       i.e. each column clipped to L2 norm <= 1e-5, then scaled by 1e5."""
    w = jax.random.uniform(key, (embedding_size, num_classes),
                           dtype=jnp.float32, minval=-1.0, maxval=1.0)
    col_norm = jnp.sqrt(jnp.sum(w * w, axis=0, keepdims=True))
    maxnorm = 1e-5
    scale = jnp.where(col_norm > maxnorm, maxnorm / (col_norm + 1e-7), 1.0)
    return w * scale * 1e5


if __name__ == "__main__":
    key = jax.random.PRNGKey(0)
    k_emb, k_w, k_emb2, k_w2 = jax.random.split(key, 4)

    def reference(e, w):
        norm = jnp.sqrt(jnp.sum(w * w, axis=0, keepdims=True))
        return e @ (w / jnp.maximum(norm, 1e-12))

    # Small shapes consistent with the module.
    batch, embedding_size, num_classes = 8, 32, 16
    embeddings = jax.random.normal(k_emb, (batch, embedding_size), jnp.float32)
    kernel = init_classifier_kernel(k_w, embedding_size, num_classes)

    logits = jax.block_until_ready(classifier_forward(embeddings, kernel))
    ref = reference(embeddings, kernel)
    assert logits.shape == (batch, num_classes)
    assert jnp.allclose(logits, ref, atol=1e-2, rtol=1e-2), \
        float(jnp.max(jnp.abs(logits - ref)))

    # Second check exercising a multi-block (j, i, k) grid and the fused
    # sum-of-squares path across several i and k blocks.
    b2, e2, c2 = 16, 384, 256
    emb2 = jax.random.normal(k_emb2, (b2, e2), jnp.float32)
    w2 = init_classifier_kernel(k_w2, e2, c2)
    out2 = jax.block_until_ready(
        classifier_forward(emb2, w2, tm=8, tn=128, tk=128))
    ref2 = reference(emb2, w2)
    assert out2.shape == (b2, c2)
    assert jnp.allclose(out2, ref2, atol=1e-2, rtol=1e-2), \
        float(jnp.max(jnp.abs(out2 - ref2)))

    print("KERNEL_OK")
</pallas_src>

<mosaic_0001>
module attributes {stable_mosaic.version = 11 : i64} {
  func.func @_kernel_f32_out(%arg0: i32, %arg1: i32, %arg2: i32, %arg3: memref<8x128xf32, #tpu.memory_space<vmem>>, %arg4: memref<128x128xf32, #tpu.memory_space<vmem>>, %arg5: memref<8x128xf32, #tpu.memory_space<vmem>>, %arg6: memref<1x128xf32, #tpu.memory_space<vmem>>) attributes {dimension_semantics = [#tpu.dimension_semantics<parallel>, #tpu.dimension_semantics<arbitrary>, #tpu.dimension_semantics<arbitrary>], iteration_bounds = array<i64: 1, 1, 1>, scalar_prefetch = 0 : i64, scratch_operands = 1 : i64, tpu.core_type = #tpu.core_type<tc>, window_params = [{transform_indices = @transform_0, window_bounds = array<i64: 8, 128>}, {transform_indices = @transform_1, window_bounds = array<i64: 128, 128>}, {transform_indices = @transform_2, window_bounds = array<i64: 8, 128>}]} {
    %c0_i32 = arith.constant 0 : i32
    %0 = arith.cmpi eq, %arg2, %c0_i32 : i32
    %1 = arith.extui %0 : i1 to i32
    %c0_i32_0 = arith.constant 0 : i32
    %2 = arith.cmpi ne, %1, %c0_i32_0 : i32
    scf.if %2 {
      %cst_15 = arith.constant 0.000000e+00 : f32
      %20 = vector.broadcast %cst_15 : f32 to vector<8x128xf32>
      %c0_16 = arith.constant 0 : index
      %c0_17 = arith.constant 0 : index
      %21 = vector.load %arg5[%c0_16, %c0_17] : memref<8x128xf32, #tpu.memory_space<vmem>>, vector<8x128xf32>
      tpu.vector_store %arg5[%c0_16, %c0_17], %20 {strides = array<i32>} : memref<8x128xf32, #tpu.memory_space<vmem>>, vector<8x128xf32>,
    } else {
    }
    %c0_i32_1 = arith.constant 0 : i32
    %3 = arith.cmpi eq, %arg1, %c0_i32_1 : i32
    %c0_i32_2 = arith.constant 0 : i32
    %4 = arith.cmpi eq, %arg2, %c0_i32_2 : i32
    %5 = arith.andi %3, %4 : i1
    %6 = arith.extui %5 : i1 to i32
    %c0_i32_3 = arith.constant 0 : i32
    %7 = arith.cmpi ne, %6, %c0_i32_3 : i32
    scf.if %7 {
      %cst_15 = arith.constant 0.000000e+00 : f32
      %20 = vector.broadcast %cst_15 : f32 to vector<1x128xf32>
      %c0_16 = arith.constant 0 : index
      %c0_17 = arith.constant 0 : index
      %21 = vector.load %arg6[%c0_16, %c0_17] : memref<1x128xf32, #tpu.memory_space<vmem>>, vector<1x128xf32>
      tpu.vector_store %arg6[%c0_16, %c0_17], %20 {strides = array<i32>} : memref<1x128xf32, #tpu.memory_space<vmem>>, vector<1x128xf32>,
    } else {
    }
    %c0 = arith.constant 0 : index
    %c0_4 = arith.constant 0 : index
    %8 = vector.load %arg4[%c0, %c0_4] : memref<128x128xf32, #tpu.memory_space<vmem>>, vector<128x128xf32>
    %c0_i32_5 = arith.constant 0 : i32
    %9 = arith.cmpi eq, %arg1, %c0_i32_5 : i32
    %10 = arith.extui %9 : i1 to i32
    %c0_i32_6 = arith.constant 0 : i32
    %11 = arith.cmpi ne, %10, %c0_i32_6 : i32
    scf.if %11 {
      %c0_15 = arith.constant 0 : index
      %c0_16 = arith.constant 0 : index
      %20 = vector.load %arg6[%c0_15, %c0_16] : memref<1x128xf32, #tpu.memory_space<vmem>>, vector<1x128xf32>
      %21 = arith.mulf %8, %8 : vector<128x128xf32>
      %cst_17 = arith.constant dense<0.000000e+00> : vector<128xf32>
      %22 = vector.multi_reduction <add>, %21, %cst_17 [0] : vector<128x128xf32> to vector<128xf32>
      %23 = vector.shape_cast %22 : vector<128xf32> to vector<1x128xf32>
      %24 = arith.addf %20, %23 : vector<1x128xf32>
      %c0_18 = arith.constant 0 : index
      %c0_19 = arith.constant 0 : index
      %25 = vector.load %arg6[%c0_18, %c0_19] : memref<1x128xf32, #tpu.memory_space<vmem>>, vector<1x128xf32>
      tpu.vector_store %arg6[%c0_18, %c0_19], %24 {strides = array<i32>} : memref<1x128xf32, #tpu.memory_space<vmem>>, vector<1x128xf32>,
    } else {
    }
    %c0_7 = arith.constant 0 : index
    %c0_8 = arith.constant 0 : index
    %12 = vector.load %arg3[%c0_7, %c0_8] : memref<8x128xf32, #tpu.memory_space<vmem>>, vector<8x128xf32>
    %c0_9 = arith.constant 0 : index
    %c0_10 = arith.constant 0 : index
    %13 = vector.load %arg5[%c0_9, %c0_10] : memref<8x128xf32, #tpu.memory_space<vmem>>, vector<8x128xf32>
    %cst = arith.constant dense<0.000000e+00> : vector<8x128xf32>
    %14 = tpu.matmul %12, %8, %cst {dimension_numbers = #tpu.dot_dimension_numbers<[1], [0], [0], [1], [0, 0, 1, 1], [], []>} : vector<8x128xf32>, vector<128x128xf32>, vector<8x128xf32> -> vector<8x128xf32>
    %15 = arith.addf %13, %14 : vector<8x128xf32>
    %c0_11 = arith.constant 0 : index
    %c0_12 = arith.constant 0 : index
    %16 = vector.load %arg5[%c0_11, %c0_12] : memref<8x128xf32, #tpu.memory_space<vmem>>, vector<8x128xf32>
    tpu.vector_store %arg5[%c0_11, %c0_12], %15 {strides = array<i32>} : memref<8x128xf32, #tpu.memory_space<vmem>>, vector<8x128xf32>,
    %c0_i32_13 = arith.constant 0 : i32
    %17 = arith.cmpi eq, %arg2, %c0_i32_13 : i32
    %18 = arith.extui %17 : i1 to i32
    %c0_i32_14 = arith.constant 0 : i32
    %19 = arith.cmpi ne, %18, %c0_i32_14 : i32
    scf.if %19 {
      %c0_15 = arith.constant 0 : index
      %c0_16 = arith.constant 0 : index
      %20 = vector.load %arg6[%c0_15, %c0_16] : memref<1x128xf32, #tpu.memory_space<vmem>>, vector<1x128xf32>
      %21 = math.sqrt %20 : vector<1x128xf32>
      %cst_17 = arith.constant 9.99999996E-13 : f32
      %22 = vector.broadcast %cst_17 : f32 to vector<1x128xf32>
      %23 = arith.maximumf %21, %22 : vector<1x128xf32>
      %cst_18 = arith.constant 1.000000e+00 : f32
      %24 = vector.broadcast %cst_18 : f32 to vector<1x128xf32>
      %25 = arith.divf %24, %23 : vector<1x128xf32>
      %c0_19 = arith.constant 0 : index
      %c0_20 = arith.constant 0 : index
      %26 = vector.load %arg5[%c0_19, %c0_20] : memref<8x128xf32, #tpu.memory_space<vmem>>, vector<8x128xf32>
      %27 = vector.broadcast %25 : vector<1x128xf32> to vector<8x128xf32>
      %28 = arith.mulf %26, %27 : vector<8x128xf32>
      %c0_21 = arith.constant 0 : index
      %c0_22 = arith.constant 0 : index
      %29 = vector.load %arg5[%c0_21, %c0_22] : memref<8x128xf32, #tpu.memory_space<vmem>>, vector<8x128xf32>
      tpu.vector_store %arg5[%c0_21, %c0_22], %28 {strides = array<i32>} : memref<8x128xf32, #tpu.memory_space<vmem>>, vector<8x128xf32>,
    } else {
    }
    return
  }
  func.func @transform_0(%arg0: i32, %arg1: i32, %arg2: i32) -> (i32, i32) {
    %c0_i32 = arith.constant 0 : i32
    return %arg1, %arg2 : i32, i32
  }
  func.func @transform_1(%arg0: i32, %arg1: i32, %arg2: i32) -> (i32, i32) {
    %c0_i32 = arith.constant 0 : i32
    return %arg2, %arg0 : i32, i32
  }
  func.func @transform_2(%arg0: i32, %arg1: i32, %arg2: i32) -> (i32, i32) {
    %c0_i32 = arith.constant 0 : i32
    return %arg1, %arg0 : i32, i32
  }
}

</mosaic_0001>

<bundles_post_ra>
// kernel: tpu_custom_call.1
= control target key start
LH: loop header
LB: loop body
LE: loop exit
PB: predicated region body
PF: predicated region fallthrough
CT: control target
= control target key end

     0   :  { %7 = vsyncpa [#allocation4], 0  ;;  %s455_s0 = inlined_call_operand.hbm [shape: f32[8,128], index: 0, kind: input, shape index: {}]   ;;  %s456_s1 = inlined_call_operand.hbm [shape: f32[128,128], index: 1, kind: input, shape index: {}]   ;;  %s457_s2 = inlined_call_operand.hbm [shape: f32[8,128], index: 2, kind: output, shape index: {}]  }
   0x1   :  { %8 = vsyncpa [#allocation7], 0 }
   0x2   :  { %9 = vsyncpa [#allocation5], 0  ;;  %s381_s9 = smov [#allocation3]   ;;  %s382_s11 = smov [#allocation6]  }
   0x3   :  { %s16_s10 = sshll.u32 %s381_s9, 4  ;;  %s25_s12 = sshll.u32 %s382_s11, 4  ;;  %s17_s10 = int_to_ptr.vmem [resolvable:$true] %s16_s10  ;;  %s404_s12 = int_to_ptr.vmem [resolvable:$true] %s25_s12 }
   0x4   :  { %s309_s15 = scalar_lea.hbm %s455_s0, 128 }
   0x5   :  { %p310_p0 = scmp.ne.s32.totalorder %s455_s0, %s309_s15  ;;  %p313_p1 = scmp.lt.u32.totalorder %s309_s15, %s455_s0 }
   0x7   :  { %p315_p2 = pnand %p313_p1, %p310_p0 }
   0x9   :  { %318 = shalt.err (!%p315_p2)
}
   0xa   :  { %s319_s20 = scalar_lea.vmem %s17_s10, 128  ;;  %p324_p4 = scmp.lt.s32.totalorder %s17_s10, %s17_s10 }
   0xb   :  { %p320_p3 = scmp.ne.s32.totalorder %s17_s10, %s319_s20  ;;  %p325_p5 = scmp.lt.s32.totalorder %s319_s20, %s319_s20 }
   0xd   :  { %p326_p6 = por %p325_p5, %p324_p4 }
   0xf   :  { %p327_p7 = pnand %p326_p6, %p320_p3 }
  0x11   :  { %330 = shalt.err (!%p327_p7)
}
  0x12   :  { %19 = dma.hbm_to_vmem [thread:$0]  %s455_s0, 128, %s17_s10, [#allocation4]  }
  0x13   :  { %s331_s25 = scalar_lea.hbm %s456_s1, 2048 }
  0x14   :  { %p332_p8 = scmp.ne.s32.totalorder %s456_s1, %s331_s25  ;;  %p335_p9 = scmp.lt.u32.totalorder %s331_s25, %s456_s1 }
  0x16   :  { %p337_p10 = pnand %p335_p9, %p332_p8 }
  0x18   :  { %340 = shalt.err (!%p337_p10)
}
  0x19   :  { %s341_s30 = scalar_lea.vmem %s404_s12, 2048  ;;  %p346_p12 = scmp.lt.s32.totalorder %s404_s12, %s404_s12 }
  0x1a   :  { %p342_p11 = scmp.ne.s32.totalorder %s404_s12, %s341_s30  ;;  %p347_p13 = scmp.lt.s32.totalorder %s341_s30, %s341_s30 }
  0x1c   :  { %p348_p0 = por %p347_p13, %p346_p12 }
  0x1e   :  { %p349_p1 = pnand %p348_p0, %p342_p11 }
  0x20   :  { %352 = shalt.err (!%p349_p1)
}
  0x21   :  { %s383_s0 = smov 128   ;;  %s384_s3 = smov 8  }
  0x22   :  { %31 = dma.hbm_to_vmem [thread:$0]  %s456_s1, 2048, %s404_s12, [#allocation7], %s383_s0, %s383_s0, %s384_s3  }
  0x23   :  { %375 = dma.done.wait [#allocation4], 128  }
  0x24   :  { %376 = vsyncadd [#allocation4], 4294967168 }
  0x25   :  { %377 = dma.done.wait [#allocation7], 2048  }
  0x26   :  { %378 = vsyncadd [#allocation7], 4294965248  ;;  %v385_v0 = vmov 0.0|0.0   ;;  %v386_v1 = vmov 0.0   ;;  %vm387_vm0 = vmmov 0   ;;  %v49_v2 = vld [vmem:[#allocation6] sm:$0xff] }
  0x27   :  { %273 = vmatprep.subr.bf16.mxu0 %v385_v0  ;;  %48 = vst [vmem:[#allocation2] sm:$0x1] %v386_v1  ;;  %270 = vmatprep.mubr.msk.f32.mxu0 %vm387_vm0, %v386_v1  ;;  %v50_v3 = vld [vmem:[#allocation6 + $0x8] sm:$0xff]  ;;  %v51_v4 = vld [vmem:[#allocation6 + $0x10] sm:$0xff]  ;;  %v69_v5 = vmul.f32 %v49_v2, %v49_v2  ;;  %v52_v8 = vld [vmem:[#allocation6 + $0x18] sm:$0xff]  ;;  %s388_s1 = smov [#allocation8]  }
  0x28   :  { %v70_v6 = vmul.f32 %v50_v3, %v50_v3  ;;  %v274_v7 = vpack.c.bf16 %v50_v3, %v49_v2  ;;  %v71_v9 = vmul.f32 %v51_v4, %v51_v4  ;;  %v72_v11 = vmul.f32 %v52_v8, %v52_v8  ;;  %v53_v13 = vld [vmem:[#allocation6 + $0x20] sm:$0xff]  ;;  %v54_v14 = vld [vmem:[#allocation6 + $0x28] sm:$0xff]  ;;  %v55_v20 = vld [vmem:[#allocation6 + $0x30] sm:$0xff]  ;;  %s211_s6 = sshll.u32 %s388_s1, 4  ;;  %s212_s6 = int_to_ptr.vmem [resolvable:$true] %s211_s6 }
  0x29   :  { %v277_v12 = vpack.c.bf16 %v52_v8, %v51_v4  ;;  %v73_v16 = vmul.f32 %v53_v13, %v53_v13  ;;  %v74_v18 = vmul.f32 %v54_v14, %v54_v14  ;;  %v280_v19 = vpack.c.bf16 %v54_v14, %v53_v13  ;;  %v56_v21 = vld [vmem:[#allocation6 + $0x38] sm:$0xff]  ;;  %v57_v27 = vld [vmem:[#allocation6 + $0x40] sm:$0xff]  ;;  %v58_v28 = vld [vmem:[#allocation6 + $0x48] sm:$0xff]  ;;  %s353_s7 = scalar_lea.vmem %s212_s6, 128  ;;  %p358_p3 = scmp.lt.s32.totalorder %s212_s6, %s212_s6 }
  0x2a   :  { %v85_v10 = vadd.f32 %v70_v6, %v69_v5  ;;  %275 = vmatpush3.bf16.msra.mxu0 %v274_v7  ;;  %v75_v23 = vmul.f32 %v55_v20, %v55_v20  ;;  %v76_v25 = vmul.f32 %v56_v21, %v56_v21  ;;  %v283_v26 = vpack.c.bf16 %v56_v21, %v55_v20  ;;  %v59_v34 = vld [vmem:[#allocation6 + $0x50] sm:$0xff]  ;;  %v60_v35 = vld [vmem:[#allocation6 + $0x58] sm:$0xff]  ;;  %v61_v41 = vld [vmem:[#allocation6 + $0x60] sm:$0xff]  ;;  %p354_p2 = scmp.ne.s32.totalorder %s212_s6, %s353_s7  ;;  %p359_p4 = scmp.lt.s32.totalorder %s353_s7, %s353_s7 }
  0x2b   :  { %276 = vmatprep.subr.bf16.mxu0 %v385_v0  ;;  %v77_v30 = vmul.f32 %v57_v27, %v57_v27  ;;  %v78_v32 = vmul.f32 %v58_v28, %v58_v28  ;;  %v286_v33 = vpack.c.bf16 %v58_v28, %v57_v27  ;;  %v79_v37 = vmul.f32 %v59_v34, %v59_v34  ;;  %v62_v42 = vld [vmem:[#allocation6 + $0x68] sm:$0xff]  ;;  %v63_v48 = vld [vmem:[#allocation6 + $0x70] sm:$0xff]  ;;  %v64_v49 = vld [vmem:[#allocation6 + $0x78] sm:$0xff] }
  0x2c   :  { %v86_v15 = vadd.f32 %v85_v10, %v71_v9  ;;  %v80_v39 = vmul.f32 %v60_v35, %v60_v35  ;;  %v289_v40 = vpack.c.bf16 %v60_v35, %v59_v34  ;;  %v81_v44 = vmul.f32 %v61_v41, %v61_v41  ;;  %v108_v57 = vld [vmem:[#allocation3] sm:$0xff]  ;;  %p360_p5 = por %p359_p4, %p358_p3 }
  0x2d   :  { %v82_v46 = vmul.f32 %v62_v42, %v62_v42  ;;  %v292_v47 = vpack.c.bf16 %v62_v42, %v61_v41  ;;  %v83_v51 = vmul.f32 %v63_v48, %v63_v48  ;;  %v84_v53 = vmul.f32 %v64_v49, %v64_v49 }
  0x2e   :  { %v87_v17 = vadd.f32 %v86_v15, %v72_v11  ;;  %278 = vmatpush3.bf16.msra.mxu0 %v277_v12  ;;  %v295_v54 = vpack.c.bf16 %v64_v49, %v63_v48  ;;  %v68_v63 = vld [vmem:[#allocation2] sm:$0x1]  ;;  %v198_v9 = vlaneseq  ;;  %p361_p6 = pnand %p360_p5, %p354_p2 }
  0x2f   :  { %279 = vmatprep.subr.bf16.mxu0 %v385_v0 }
  0x30   :  { %v88_v22 = vadd.f32 %v87_v17, %v73_v16  ;;  %v199_v10 = vshrl.u32 %v198_v9, 7 }
  0x32   :  { %v89_v24 = vadd.f32 %v88_v22, %v74_v18  ;;  %281 = vmatpush3.bf16.msra.mxu0 %v280_v19  ;;  %v200_v11 = vsub.s32 0, %v199_v10 }
  0x33   :  { %282 = vmatprep.subr.bf16.mxu0 %v385_v0 }
  0x34   :  { %v90_v29 = vadd.f32 %v89_v24, %v75_v23 }
  0x36   :  { %v91_v31 = vadd.f32 %v90_v29, %v76_v25  ;;  %284 = vmatpush3.bf16.msra.mxu0 %v283_v26 }
  0x37   :  { %285 = vmatprep.subr.bf16.mxu0 %v385_v0 }
  0x38   :  { %v92_v36 = vadd.f32 %v91_v31, %v77_v30 }
  0x3a   :  { %v93_v38 = vadd.f32 %v92_v36, %v78_v32  ;;  %287 = vmatpush3.bf16.msra.mxu0 %v286_v33 }
  0x3b   :  { %288 = vmatprep.subr.bf16.mxu0 %v385_v0 }
  0x3c   :  { %v94_v43 = vadd.f32 %v93_v38, %v79_v37 }
  0x3e   :  { %v95_v45 = vadd.f32 %v94_v43, %v80_v39  ;;  %290 = vmatpush3.bf16.msra.mxu0 %v289_v40 }
  0x3f   :  { %291 = vmatprep.subr.bf16.mxu0 %v385_v0 }
  0x40   :  { %v96_v50 = vadd.f32 %v95_v45, %v81_v44 }
  0x42   :  { %v97_v52 = vadd.f32 %v96_v50, %v82_v46  ;;  %293 = vmatpush3.bf16.msra.mxu0 %v292_v47 }
  0x43   :  { %294 = vmatprep.subr.bf16.mxu0 %v385_v0 }
  0x44   :  { %v98_v55 = vadd.f32 %v97_v52, %v83_v51 }
  0x46   :  { %v99_v56 = vadd.f32 %v98_v55, %v84_v53  ;;  %296 = vmatpush3.bf16.msra.mxu0 %v295_v54 }
  0x48   :  { %v100_v58 = vrot.slane %v99_v56, 4 }
  0x49   :  { %271 = vmatmul.mubr.f32.vlgmr.msra.gmra.mrb[0].mxu0 %v108_v57 }
  0x4a   :  { %v101_v59 = vadd.f32 %v100_v58, %v99_v56 }
  0x4c   :  { %v102_v60 = vrot.slane %v101_v59, 2 }
  0x4e   :  { %v103_v61 = vadd.f32 %v102_v60, %v101_v59 }
  0x50   :  { %v104_v62 = vrot.slane %v103_v61, 1 }
  0x52   :  { %v105_v1 = vadd.f32 %v104_v62, %v103_v61 }
  0x54   :  { %v106_v2 = vadd.f32 %v105_v1, %v68_v63 }
  0x56   :  { %107 = vst [vmem:[#allocation2] sm:$0x1] %v106_v2 }
  0x5d   :  { %v185_v3 = vld [vmem:[#allocation2] sm:$0x1] }
  0x5e   :  { %305 = vrsqrt.f32 %v185_v3  ;;  %vm188_vm1 = vcmp.eq.f32.partialorder %v185_v3, inf  ;;  %v191_v0 = vand.u32 2147483648, %v185_v3  ;;  %vm190_vm2 = vcmp.eq.f32.partialorder %v185_v3, 0.0 }
  0x68   :  { %v306_v4 = vpop.eup %305 }
  0x69   :  { %v187_v5 = vmul.f32 %v306_v4, %v185_v3 }
  0x6b   :  { %v189_v6 = vsel %vm188_vm1, %v185_v3, %v187_v5 }
  0x6c   :  { %v192_v7 = vsel %vm190_vm2, %v191_v0, %v189_v6 }
  0x6d   :  { %v193_v8 = vmax.f32 %v192_v7, 1e-12 }
  0x6f   :  { %307 = vrcp.f32 %v193_v8 }
  0x79   :  { %v308_v12 = vpop.eup %307 }
  0x7a   :  { %v201_v13 = vrot.slane %v308_v12, %v200_v11 }
 0x11c   :  { %v176_v14 = vpop.f32.mrb[0].mxu0 }
 0x11d   :  { %v272_v15 = vpop.f32.mrb[1].mxu0  ;;  %v203_v16 = vmul.f32 %v201_v13, %v176_v14 }
 0x11f   :  { %204 = vst [vmem:[#allocation8] sm:$0xff] %v203_v16 }
 0x120   :  { %364 = shalt.err (!%p361_p6)
}
 0x121   :  { %s365_s10 = scalar_lea.hbm %s457_s2, 128 }
 0x122   :  { %p366_p7 = scmp.ne.s32.totalorder %s457_s2, %s365_s10  ;;  %p369_p8 = scmp.lt.u32.totalorder %s365_s10, %s457_s2 }
 0x124   :  { %p371_p9 = pnand %p369_p8, %p366_p7 }
 0x126   :  { %374 = shalt.err (!%p371_p9)
}
 0x127   :  { %214 = dma.vmem_to_hbm [thread:$0]  %s212_s6, 128, %s457_s2, [#allocation5]  }
 0x128   :  { %379 = dma.done.wait [#allocation5], 128  }
 0x129   :  { %380 = vsyncadd [#allocation5], 4294967168 }
 0x12a   :  { %218 = vsyncpa [#allocation4], 1 }
 0x12b   :  { %219 = vsyncpa [#allocation7], 1 }
 0x12c   :  { %220 = vsyncpa [#allocation5], 1 }

</bundles_post_ra>
